<compile_context>
chip_gen: v6e
topology: v6e:2x2x1
jax: 0.10.0
libtpu: 0.0.40
codegen_flags: <defaults>
</compile_context>

<pallas_src>
import functools

import jax
import jax.numpy as jnp
from jax.experimental import pallas as pl
from jax.experimental.pallas import tpu as pltpu


def _round_up(a: int, b: int) -> int:
    return ((a + b - 1) // b) * b


def _dropout_bits(shape, seed, row0):
    """One murmur3-finalizer hash per element; hi/lo 16 bits feed the two dropout layers.

    All arithmetic is wrapping int32; shifts are logical, so both 16-bit halves are uniform
    over [0, 65535] and effectively independent of each other.  The per-element counter
    row*cols+col wraps for M*Hp > 2^31, which only reuses hash inputs across very distant
    rows (mild correlation, not a practical issue).
    """
    row = jax.lax.broadcasted_iota(jnp.int32, shape, 0) + row0
    col = jax.lax.broadcasted_iota(jnp.int32, shape, 1)
    x = row * jnp.int32(shape[1]) + col                       # unique per-element counter
    x = x + seed * jnp.int32(-1640531535)                     # 0x9E3779B1 (golden ratio)
    x = x ^ jax.lax.shift_right_logical(x, 16)
    x = x * jnp.int32(-2048145189)                            # 0x85EBCA6B
    x = x ^ jax.lax.shift_right_logical(x, 13)
    x = x * jnp.int32(-1028477387)                            # 0xC2B2AE35
    x = x ^ jax.lax.shift_right_logical(x, 16)
    return x


def _make_ffnn_kernel(training: bool, drop_p: float):
    keep_p = 1.0 - drop_p
    inv_keep = 1.0 / keep_p
    # 16-bit keep threshold: P(keep) = thr16 / 65536 (exactly keep_p up to 2^-16 rounding).
    thr16 = int(round(keep_p * 65536.0))

    def kernel(seed_ref, x_ref, w1_ref, b1_ref, w2_ref, b2_ref, o_ref):
        tm = x_ref.shape[0]
        row0 = pl.program_id(0) * tm

        # ---- layer 1: Linear (bf16 MXU, f32 accumulate) + bias + ReLU (+ Dropout) ----
        h = jnp.dot(x_ref[...].astype(jnp.bfloat16), w1_ref[...],
                    preferred_element_type=jnp.float32)
        h = jnp.maximum(h + b1_ref[...], 0.0)
        if training:
            bits = _dropout_bits(h.shape, seed_ref[0], row0)   # one hash, reused by layer 2
            keep1 = jax.lax.shift_right_logical(bits, 16) < jnp.int32(thr16)
            h = jnp.where(keep1, h * inv_keep, 0.0)

        # ---- layer 2: Linear + bias + ReLU (+ Dropout) --------------------------------
        y = jnp.dot(h.astype(jnp.bfloat16), w2_ref[...],
                    preferred_element_type=jnp.float32)
        y = jnp.maximum(y + b2_ref[...], 0.0)
        if training:
            keep2 = (bits & jnp.int32(0xFFFF)) < jnp.int32(thr16)
            y = jnp.where(keep2, y * inv_keep, 0.0)

        o_ref[...] = y.astype(o_ref.dtype)

    return kernel


@functools.partial(jax.jit,
                   static_argnames=("training", "drop_p", "tm", "out_dtype"))
def ffnn_forward(x, w1, b1, w2, b2, seed, *, training=False, drop_p=0.2, tm=1024,
                 out_dtype=None):
    """FFNN forward. x: (..., embeds_dim) -> (..., hidden_dim). Weights stored (in, out).

    out_dtype: output element type; pass jnp.bfloat16 to halve output HBM traffic if the
    consumer tolerates it (largest relative win on v5e/v6e).
    """
    orig_shape = x.shape
    D = orig_shape[-1]
    H = w2.shape[0]                       # logical hidden dim
    out_dtype = x.dtype if out_dtype is None else out_dtype

    x2 = x.reshape(-1, D)
    M = x2.shape[0]

    # Row tile: big tiles amortize the ~0.35us/step overhead and give lane-/sublane-dense
    # DMA; always 8-aligned, shrunk for tiny inputs.  Whenever M allows, force the tile
    # count to an even number >= 2 so both v7x TensorCores get balanced work under the
    # "parallel" row axis (no-op cost on the single-TC v5e/v6e chips).
    tm_eff = max(8, min(tm, _round_up(M, 8)))
    if M > 8:
        n_even = max(2, _round_up(pl.cdiv(M, tm_eff), 2))
        tm_eff = max(8, _round_up(pl.cdiv(M, n_even), 8))
    n_tiles = pl.cdiv(M, tm_eff)          # partial last block OK: OOB output rows are masked

    # Lane-dense hidden dim: pad 150 -> 256 so h / y / output are 128-aligned (no vst.msk)
    # and layer 2 runs K=N=256, matching the 256-wide MXU on v6e/v7x.  D is NOT padded:
    # layer-1 FLOPs are negligible and padding D would 4x the x DMA for nothing.
    Hp = _round_up(H, 128)
    if Hp != H:
        w1 = jnp.pad(w1, ((0, 0), (0, Hp - H)))
        b1 = jnp.pad(b1, (0, Hp - H))
        w2 = jnp.pad(w2, ((0, Hp - H), (0, Hp - H)))
        b2 = jnp.pad(b2, (0, Hp - H))

    # bf16 weights: native MXU path on v5e/v6e, half the resident VMEM (matters on v7x).
    w1b = w1.astype(jnp.bfloat16)
    w2b = w2.astype(jnp.bfloat16)
    b1_2d = b1.reshape(1, Hp).astype(jnp.float32)
    b2_2d = b2.reshape(1, Hp).astype(jnp.float32)
    seed_arr = jnp.asarray([seed], dtype=jnp.int32)

    kernel = _make_ffnn_kernel(training, drop_p)

    out = pl.pallas_call(
        kernel,
        out_shape=jax.ShapeDtypeStruct((M, Hp), out_dtype),
        grid_spec=pltpu.PrefetchScalarGridSpec(
            num_scalar_prefetch=1,                          # seed -> SMEM
            grid=(n_tiles,),
            in_specs=[
                # x row tile (streamed).  If profiling shows exposed DMA latency on this
                # small tile, add pipeline_mode=pl.Buffered(3) here only.
                pl.BlockSpec((tm_eff, D), lambda i, seed: (i, 0)),
                pl.BlockSpec((D, Hp), lambda i, seed: (0, 0)),   # W1 (VMEM resident,
                pl.BlockSpec((1, Hp), lambda i, seed: (0, 0)),   #  constant block index
                pl.BlockSpec((Hp, Hp), lambda i, seed: (0, 0)),  #  -> fetched once)
                pl.BlockSpec((1, Hp), lambda i, seed: (0, 0)),
            ],
            out_specs=pl.BlockSpec((tm_eff, Hp), lambda i, seed: (i, 0)),
        ),
        # No vmem_limit override: even at tm=2048 the footprint (double-buffered x/out tiles
        # + resident bf16 weights) is a few MiB, inside every chip's scoped default.
        compiler_params=pltpu.CompilerParams(
            dimension_semantics=("parallel",),
        ),
    )(seed_arr, x2, w1b, b1_2d, w2b, b2_2d)

    # TODO(synk): for fused model pipelines, keep the Hp=256 padded layout flowing to the
    # consumer and strip once at the model boundary instead of slicing here every call.
    return out[:, :H].reshape(orig_shape[:-1] + (H,))


def init_ffnn_params(key, embeds_dim, hidden_dim=150, dtype=jnp.float32):
    """Deterministic init matching nn.Linear's U(-1/sqrt(fan_in), 1/sqrt(fan_in))."""
    k1, k2, k3, k4 = jax.random.split(key, 4)
    bound1 = 1.0 / (embeds_dim ** 0.5)
    bound2 = 1.0 / (hidden_dim ** 0.5)
    # stored as (in, out) so the kernel computes x @ W (equivalent to torch's x @ W.T)
    w1 = jax.random.uniform(k1, (embeds_dim, hidden_dim), dtype, -bound1, bound1)
    b1 = jax.random.uniform(k2, (hidden_dim,), dtype, -bound1, bound1)
    w2 = jax.random.uniform(k3, (hidden_dim, hidden_dim), dtype, -bound2, bound2)
    b2 = jax.random.uniform(k4, (hidden_dim,), dtype, -bound2, bound2)
    return w1, b1, w2, b2


if __name__ == "__main__":
    key = jax.random.PRNGKey(0)
    k_x, k_p = jax.random.split(key)

    batch, seq, embeds_dim, hidden_dim = 2, 8, 32, 150
    x = jax.random.normal(k_x, (batch, seq, embeds_dim), dtype=jnp.float32)
    w1, b1, w2, b2 = init_ffnn_params(k_p, embeds_dim, hidden_dim)

    # eval-mode forward (dropout = identity) -> deterministic, matches model.eval()
    y = jax.block_until_ready(ffnn_forward(x, w1, b1, w2, b2, seed=0, training=False))
    assert y.shape == (batch, seq, hidden_dim), y.shape

    # reference mirroring the kernel's bf16-input / f32-accumulate math
    bf16 = jnp.bfloat16
    h_ref = jnp.maximum(
        jnp.dot(x.astype(bf16), w1.astype(bf16),
                preferred_element_type=jnp.float32) + b1, 0.0)
    ref = jnp.maximum(
        jnp.dot(h_ref.astype(bf16), w2.astype(bf16),
                preferred_element_type=jnp.float32) + b2, 0.0)
    assert jnp.allclose(y, ref, atol=1e-2, rtol=1e-2), float(jnp.max(jnp.abs(y - ref)))

    # training-mode smoke test (stochastic dropout via one in-kernel counter hash per element)
    y_train = jax.block_until_ready(
        ffnn_forward(x, w1, b1, w2, b2, seed=1234, training=True))
    assert y_train.shape == (batch, seq, hidden_dim)
    assert bool(jnp.all(jnp.isfinite(y_train)))

    print("KERNEL_OK")
</pallas_src>

<mosaic_0001>
module attributes {stable_mosaic.version = 11 : i64} {
  func.func @kernel(%arg0: i32, %arg1: memref<1xi32, #tpu.memory_space<smem>>, %arg2: memref<8x32xf32, #tpu.memory_space<vmem>>, %arg3: memref<32x256xbf16, #tpu.memory_space<vmem>>, %arg4: memref<1x256xf32, #tpu.memory_space<vmem>>, %arg5: memref<256x256xbf16, #tpu.memory_space<vmem>>, %arg6: memref<1x256xf32, #tpu.memory_space<vmem>>, %arg7: memref<8x256xf32, #tpu.memory_space<vmem>>) attributes {dimension_semantics = [#tpu.dimension_semantics<parallel>], iteration_bounds = array<i64: 2>, scalar_prefetch = 1 : i64, scratch_operands = 0 : i64, tpu.core_type = #tpu.core_type<tc>, window_params = [{transform_indices = @transform_0, window_bounds = array<i64: 8, 32>}, {pipeline_mode = #tpu.pipeline_mode<synchronous>, transform_indices = @transform_1, window_bounds = array<i64: 32, 256>}, {pipeline_mode = #tpu.pipeline_mode<synchronous>, transform_indices = @transform_2, window_bounds = array<i64: 1, 256>}, {pipeline_mode = #tpu.pipeline_mode<synchronous>, transform_indices = @transform_3, window_bounds = array<i64: 256, 256>}, {pipeline_mode = #tpu.pipeline_mode<synchronous>, transform_indices = @transform_4, window_bounds = array<i64: 1, 256>}, {transform_indices = @transform_5, window_bounds = array<i64: 8, 256>}]} {
    %c0 = arith.constant 0 : index
    %c0_0 = arith.constant 0 : index
    %0 = vector.load %arg2[%c0, %c0_0] : memref<8x32xf32, #tpu.memory_space<vmem>>, vector<8x32xf32>
    %1 = arith.truncf %0 : vector<8x32xf32> to vector<8x32xbf16>
    %c0_1 = arith.constant 0 : index
    %c0_2 = arith.constant 0 : index
    %2 = vector.load %arg3[%c0_1, %c0_2] : memref<32x256xbf16, #tpu.memory_space<vmem>>, vector<32x256xbf16>
    %cst = arith.constant dense<0.000000e+00> : vector<8x256xf32>
    %3 = tpu.matmul %1, %2, %cst {dimension_numbers = #tpu.dot_dimension_numbers<[1], [0], [0], [1], [0, 0, 1, 1], [], []>} : vector<8x32xbf16>, vector<32x256xbf16>, vector<8x256xf32> -> vector<8x256xf32>
    %c0_3 = arith.constant 0 : index
    %c0_4 = arith.constant 0 : index
    %4 = vector.load %arg4[%c0_3, %c0_4] : memref<1x256xf32, #tpu.memory_space<vmem>>, vector<1x256xf32>
    %5 = vector.broadcast %4 : vector<1x256xf32> to vector<8x256xf32>
    %6 = arith.addf %3, %5 : vector<8x256xf32>
    %cst_5 = arith.constant 0.000000e+00 : f32
    %7 = vector.broadcast %cst_5 : f32 to vector<8x256xf32>
    %8 = arith.maximumf %6, %7 : vector<8x256xf32>
    %9 = arith.truncf %8 : vector<8x256xf32> to vector<8x256xbf16>
    %c0_6 = arith.constant 0 : index
    %c0_7 = arith.constant 0 : index
    %10 = vector.load %arg5[%c0_6, %c0_7] : memref<256x256xbf16, #tpu.memory_space<vmem>>, vector<256x256xbf16>
    %cst_8 = arith.constant dense<0.000000e+00> : vector<8x256xf32>
    %11 = tpu.matmul %9, %10, %cst_8 {dimension_numbers = #tpu.dot_dimension_numbers<[1], [0], [0], [1], [0, 0, 1, 1], [], []>} : vector<8x256xbf16>, vector<256x256xbf16>, vector<8x256xf32> -> vector<8x256xf32>
    %c0_9 = arith.constant 0 : index
    %c0_10 = arith.constant 0 : index
    %12 = vector.load %arg6[%c0_9, %c0_10] : memref<1x256xf32, #tpu.memory_space<vmem>>, vector<1x256xf32>
    %13 = vector.broadcast %12 : vector<1x256xf32> to vector<8x256xf32>
    %14 = arith.addf %11, %13 : vector<8x256xf32>
    %cst_11 = arith.constant 0.000000e+00 : f32
    %15 = vector.broadcast %cst_11 : f32 to vector<8x256xf32>
    %16 = arith.maximumf %14, %15 : vector<8x256xf32>
    %c0_12 = arith.constant 0 : index
    %c0_13 = arith.constant 0 : index
    %17 = vector.load %arg7[%c0_12, %c0_13] : memref<8x256xf32, #tpu.memory_space<vmem>>, vector<8x256xf32>
    tpu.vector_store %arg7[%c0_12, %c0_13], %16 {strides = array<i32>} : memref<8x256xf32, #tpu.memory_space<vmem>>, vector<8x256xf32>,
    return
  }
  func.func @transform_0(%arg0: i32, %arg1: memref<1xi32, #tpu.memory_space<smem>>) -> (i32, i32) {
    %c0_i32 = arith.constant 0 : i32
    %c0_i32_0 = arith.constant 0 : i32
    return %arg0, %c0_i32 : i32, i32
  }
  func.func @transform_1(%arg0: i32, %arg1: memref<1xi32, #tpu.memory_space<smem>>) -> (i32, i32) {
    %c0_i32 = arith.constant 0 : i32
    %c0_i32_0 = arith.constant 0 : i32
    %c0_i32_1 = arith.constant 0 : i32
    return %c0_i32, %c0_i32_0 : i32, i32
  }
  func.func @transform_2(%arg0: i32, %arg1: memref<1xi32, #tpu.memory_space<smem>>) -> (i32, i32) {
    %c0_i32 = arith.constant 0 : i32
    %c0_i32_0 = arith.constant 0 : i32
    %c0_i32_1 = arith.constant 0 : i32
    return %c0_i32, %c0_i32_0 : i32, i32
  }
  func.func @transform_3(%arg0: i32, %arg1: memref<1xi32, #tpu.memory_space<smem>>) -> (i32, i32) {
    %c0_i32 = arith.constant 0 : i32
    %c0_i32_0 = arith.constant 0 : i32
    %c0_i32_1 = arith.constant 0 : i32
    return %c0_i32, %c0_i32_0 : i32, i32
  }
  func.func @transform_4(%arg0: i32, %arg1: memref<1xi32, #tpu.memory_space<smem>>) -> (i32, i32) {
    %c0_i32 = arith.constant 0 : i32
    %c0_i32_0 = arith.constant 0 : i32
    %c0_i32_1 = arith.constant 0 : i32
    return %c0_i32, %c0_i32_0 : i32, i32
  }
  func.func @transform_5(%arg0: i32, %arg1: memref<1xi32, #tpu.memory_space<smem>>) -> (i32, i32) {
    %c0_i32 = arith.constant 0 : i32
    %c0_i32_0 = arith.constant 0 : i32
    return %arg0, %c0_i32 : i32, i32
  }
}

</mosaic_0001>

<bundles_post_ra>
// kernel: ffnn_forward.1
= control target key start
LH: loop header
LB: loop body
LE: loop exit
PB: predicated region body
PF: predicated region fallthrough
CT: control target
= control target key end

     0   :  { %s771_s21 = smov 0   ;;  %s906_s0 = inlined_call_operand.<no memory space> [shape: s32[1], index: 0, kind: input, shape index: {}]   ;;  %s907_s1 = inlined_call_operand.vmem [shape: f32[16,32], index: 1, kind: input, shape index: {}]   ;;  %s908_s2 = inlined_call_operand.vmem [shape: bf16[32,256], index: 2, kind: input, shape index: {}]   ;;  %s909_s3 = inlined_call_operand.vmem [shape: f32[1,256], index: 3, kind: input, shape index: {}]   ;;  %s910_s4 = inlined_call_operand.vmem [shape: bf16[256,256], index: 4, kind: input, shape index: {}]   ;;  %s911_s5 = inlined_call_operand.vmem [shape: f32[1,256], index: 5, kind: input, shape index: {}]   ;;  %s912_s6 = inlined_call_operand.vmem [shape: f32[16,256], index: 6, kind: output, shape index: {}]  }
   0x1 LB: > { %s616_s0 = sadd.s32 4294967295, %s733_s21   ;;  %p620_p0 = scmp.ge.s32.totalorder %s733_s21, 1  ;;  %s733_s21 = sphi %s771_s21, %s17_s21  }
   0x2   : > { %p188_p1 = scmp.lt.s32.totalorder %s733_s21, 3 }
   0x4   : > { %p189_p2 = pnand %p620_p0, %p188_p1 }
   0x5   : > { %p215_p3 = scmp.lt.s32.totalorder (!%p189_p2), %s616_s0, 1 }
   0x6   : > { %192 = sbr.rel (%p189_p2) target bundleno = 422 (0x1a6), region = 40 }
   0xb   : > { %v673_v0 = vld [vmem:[%s908_s2 + $0x14] ss:$8 sps:$4 sm:$0xff]   ;;  %v675_v1 = vld [vmem:[%s908_s2 + $0x10] ss:$8 sps:$4 sm:$0xff]   ;;  %v735_v2 = vmov 0   ;;  %s914_s0 = smov (!%p215_p3, %s616_s0), 1  ;;  %v233_v39 = vlaneseq }
   0xc   : > { %299 = vmatprep.mubr.bf16.mxu0 %v735_v2  ;;  %279 = vmatprep.subr.bf16.mxu0 %v673_v0  ;;  %v676_v3 = vld [vmem:[%s908_s2 + $0x4] ss:$8 sps:$4 sm:$0xff]   ;;  %v678_v4 = vld [vmem:[%s908_s2] ss:$8 sps:$4 sm:$0xff]   ;;  %v679_v5 = vld [vmem:[%s910_s4 + $0x74] ss:$8 sps:$4 sm:$0xff]  }
   0xd   : > { %280 = vmatpush1.bf16.msra.mxu0 %v675_v1  ;;  %v681_v6 = vld [vmem:[%s910_s4 + $0x70] ss:$8 sps:$4 sm:$0xff]   ;;  %s621_s10 = sshll.u32 %s914_s0, 3  ;;  %v682_v7 = vld [vmem:[%s910_s4 + $0x64] ss:$8 sps:$4 sm:$0xff]   ;;  %516 = vmatprep.subr.bf16.mxu1 %v679_v5  ;;  %vm263_vm0 = vcmask 261120  }
   0xe   : > { %281 = vmatprep.subr.bf16.mxu0 %v676_v3  ;;  %s218_s15 = scalar_lea.vmem %s907_s1, %s621_s10  ;;  %517 = vmatpush1.bf16.msra.mxu1 %v681_v6  ;;  %v684_v9 = vld [vmem:[%s910_s4 + $0x60] ss:$8 sps:$4 sm:$0xff]   ;;  %v685_v11 = vld [vmem:[%s910_s4 + $0x54] ss:$8 sps:$4 sm:$0xff]   ;;  %v687_v12 = vld [vmem:[%s910_s4 + $0x50] ss:$8 sps:$4 sm:$0xff]  }
   0xf   : > { %v225_v8 = vld [vmem:[%s218_s15] sm:$0xff]  ;;  %518 = vmatprep.subr.bf16.mxu1 %v682_v7  ;;  %v691_v15 = vld [vmem:[%s910_s4 + $0x34] ss:$8 sps:$4 sm:$0xff]   ;;  %v693_v16 = vld [vmem:[%s910_s4 + $0x30] ss:$8 sps:$4 sm:$0xff]   ;;  %v234_v40 = vshrl.u32 %v233_v39, 7 }
  0x10   : > { %v226_v10 = vpack.c.bf16 %v225_v8, %v225_v8  ;;  %v688_v13 = vld [vmem:[%s910_s4 + $0x44] ss:$8 sps:$4 sm:$0xff]   ;;  %v690_v14 = vld [vmem:[%s910_s4 + $0x40] ss:$8 sps:$4 sm:$0xff]   ;;  %v697_v19 = vld [vmem:[%s910_s4 + $0x14] ss:$8 sps:$4 sm:$0xff]  }
  0x11   : > { %282 = vmatpush1.bf16.msra.mxu0 %v678_v4  ;;  %v694_v17 = vld [vmem:[%s910_s4 + $0x24] ss:$8 sps:$4 sm:$0xff]   ;;  %v696_v18 = vld [vmem:[%s910_s4 + $0x20] ss:$8 sps:$4 sm:$0xff]   ;;  %v699_v20 = vld [vmem:[%s910_s4 + $0x10] ss:$8 sps:$4 sm:$0xff]  }
  0x12   : > { %519 = vmatpush1.bf16.msra.mxu1 %v684_v9  ;;  %v700_v21 = vld [vmem:[%s910_s4 + $0x4] ss:$8 sps:$4 sm:$0xff]   ;;  %v702_v22 = vld [vmem:[%s910_s4] ss:$8 sps:$4 sm:$0xff]   ;;  %v703_v23 = vld [vmem:[%s910_s4 + $0xf4] ss:$8 sps:$4 sm:$0xff]  }
  0x13   : > { %520 = vmatprep.subr.bf16.mxu1 %v685_v11  ;;  %v705_v24 = vld [vmem:[%s910_s4 + $0xf0] ss:$8 sps:$4 sm:$0xff]   ;;  %v706_v25 = vld [vmem:[%s910_s4 + $0xe4] ss:$8 sps:$4 sm:$0xff]   ;;  %v708_v26 = vld [vmem:[%s910_s4 + $0xe0] ss:$8 sps:$4 sm:$0xff]  }
  0x14   : > { %628 = vmatmul.mubr.msk.bf16.vlgmr.msra.gmra.mxu0 %vm263_vm0, %v226_v10  ;;  %v709_v27 = vld [vmem:[%s910_s4 + $0xd4] ss:$8 sps:$4 sm:$0xff]   ;;  %v711_v28 = vld [vmem:[%s910_s4 + $0xd0] ss:$8 sps:$4 sm:$0xff]   ;;  %v712_v29 = vld [vmem:[%s910_s4 + $0xc4] ss:$8 sps:$4 sm:$0xff]  }
  0x15   : > { %v714_v30 = vld [vmem:[%s910_s4 + $0xc0] ss:$8 sps:$4 sm:$0xff]   ;;  %v715_v31 = vld [vmem:[%s910_s4 + $0xb4] ss:$8 sps:$4 sm:$0xff]   ;;  %v717_v32 = vld [vmem:[%s910_s4 + $0xb0] ss:$8 sps:$4 sm:$0xff]  }
  0x16   : > { %521 = vmatpush1.bf16.msra.mxu1 %v687_v12  ;;  %v718_v33 = vld [vmem:[%s910_s4 + $0xa4] ss:$8 sps:$4 sm:$0xff]   ;;  %v720_v34 = vld [vmem:[%s910_s4 + $0xa0] ss:$8 sps:$4 sm:$0xff]   ;;  %v721_v35 = vld [vmem:[%s910_s4 + $0x94] ss:$8 sps:$4 sm:$0xff]  }
  0x17   : > { %522 = vmatprep.subr.bf16.mxu1 %v688_v13  ;;  %v723_v36 = vld [vmem:[%s910_s4 + $0x90] ss:$8 sps:$4 sm:$0xff]   ;;  %v724_v37 = vld [vmem:[%s910_s4 + $0x84] ss:$8 sps:$4 sm:$0xff]   ;;  %v726_v38 = vld [vmem:[%s910_s4 + $0x80] ss:$8 sps:$4 sm:$0xff]  }
  0x18   : > { %v235_v41 = vsub.s32 0, %v234_v40  ;;  %v231_v42 = vld [vmem:[%s909_s3] sm:$0x3]  ;;  %v239_v43 = vsub.s32 1, %v234_v40  ;;  %s663_s9 = sshll.u32 %s914_s0, 4 }
  0x19   : > { %v344_v56 = vld [vmem:[%s911_s5] sm:$0x3]  ;;  %s223_s12 = scalar_lea.vmem %s912_s6, %s663_s9 }
  0x1a   : > { %523 = vmatpush1.bf16.msra.mxu1 %v690_v14  ;;  %v236_v44 = vrot.slane %v231_v42, %v235_v41  ;;  %v240_v45 = vrot.slane %v231_v42, %v239_v43  ;;  %v349_v57 = vrot.slane %v344_v56, %v235_v41  ;;  %v353_v58 = vrot.slane %v344_v56, %v239_v43 }
  0x1b   : > { %524 = vmatprep.subr.bf16.mxu1 %v691_v15 }
  0x1e   : > { %525 = vmatpush1.bf16.msra.mxu1 %v693_v16 }
  0x1f   : > { %526 = vmatprep.subr.bf16.mxu1 %v694_v17 }
  0x22   : > { %527 = vmatpush1.bf16.msra.mxu1 %v696_v18 }
  0x23   : > { %528 = vmatprep.subr.bf16.mxu1 %v697_v19 }
  0x26   : > { %529 = vmatpush1.bf16.msra.mxu1 %v699_v20 }
  0x27   : > { %530 = vmatprep.subr.bf16.mxu1 %v700_v21 }
  0x2a   : > { %531 = vmatpush1.bf16.msra.mxu1 %v702_v22 }
  0x2b   : > { %532 = vmatprep.subr.bf16.mxu1 %v703_v23 }
  0x2e   : > { %533 = vmatpush2.bf16.msra.mxu1 %v705_v24 }
  0x2f   : > { %534 = vmatprep.subr.bf16.mxu1 %v706_v25 }
  0x32   : > { %535 = vmatpush2.bf16.msra.mxu1 %v708_v26 }
  0x33   : > { %536 = vmatprep.subr.bf16.mxu1 %v709_v27 }
  0x36   : > { %537 = vmatpush2.bf16.msra.mxu1 %v711_v28 }
  0x37   : > { %538 = vmatprep.subr.bf16.mxu1 %v712_v29 }
  0x3a   : > { %539 = vmatpush2.bf16.msra.mxu1 %v714_v30 }
  0x3b   : > { %540 = vmatprep.subr.bf16.mxu1 %v715_v31 }
  0x3e   : > { %541 = vmatpush2.bf16.msra.mxu1 %v717_v32 }
  0x3f   : > { %542 = vmatprep.subr.bf16.mxu1 %v718_v33 }
  0x42   : > { %543 = vmatpush2.bf16.msra.mxu1 %v720_v34 }
  0x43   : > { %544 = vmatprep.subr.bf16.mxu1 %v721_v35 }
  0x46   : > { %545 = vmatpush2.bf16.msra.mxu1 %v723_v36 }
  0x47   : > { %546 = vmatprep.subr.bf16.mxu1 %v724_v37 }
  0x4a   : > { %547 = vmatpush2.bf16.msra.mxu1 %v726_v38 }
  0xd4   : > { %v301_v46 = vpop.f32.mrf.mxu0 }
  0xd5   : > { %v302_v47 = vadd.f32 %v301_v46, %v236_v44 }
  0xd6   : > { %v303_v48 = vpop.f32.mrf.mxu0 }
  0xd7   : > { %v304_v49 = vadd.f32 %v303_v48, %v240_v45  ;;  %v308_v50 = vmax.f32 %v302_v47, 0.0 }
  0xd8   : > { %v305_v51 = vpop.f32.mrf.mxu0 }
  0xd9   : > { %v309_v52 = vmax.f32 %v304_v49, 0.0  ;;  %v310_v55 = vpack.c.bf16 %v308_v50, %v308_v50 }
  0xda   : > { %v306_v53 = vpop.f32.mrf.mxu0 }
  0xdb   : > { %v311_v54 = vpack.c.bf16 %v309_v52, %v309_v52 }
  0xdd   : > { %548 = vmatprep.mubr.bf16.mxu1 %v311_v54 }
  0xde   : > { %549 = vmatmul.mubr.bf16.vlgmr.msra.gmra.mxu1 %v310_v55 }
 0x19e   : > { %v550_v59 = vpop.f32.mrf.mxu1 }
 0x19f   : > { %v551_v60 = vadd.f32 %v550_v59, %v349_v57 }
 0x1a0   : > { %v552_v61 = vpop.f32.mrf.mxu1 }
 0x1a1   : > { %v557_v62 = vmax.f32 %v551_v60, 0.0  ;;  %v553_v63 = vadd.f32 %v552_v61, %v353_v58 }
 0x1a2   : > { %v554_v0 = vpop.f32.mrf.mxu1 }
 0x1a3   : > { %559 = vst [vmem:[%s223_s12] sm:$0xff] %v557_v62  ;;  %v558_v1 = vmax.f32 %v553_v63, 0.0 }
 0x1a4   : > { %v555_v2 = vpop.f32.mrf.mxu1 }
 0x1a5   : > { %560 = vst [vmem:[%s223_s12 + $0x8] sm:$0xff] %v558_v1 }
 0x1a6 PF: > { %s17_s21 = sadd.s32 1, %s733_s21  }
 0x1a7   : > { %p14_p4 = scmp.ge.s32.totalorder %s17_s21, 4  }
 0x1a9   :  { %16 = sbr.rel (!%p14_p4) target bundleno = 1 (0x1), region = 70 }

</bundles_post_ra>
